<compile_context>
chip_gen: v5e
topology: v5e:2x2
jax: 0.10.0
libtpu: 0.0.40
codegen_flags: <defaults>
</compile_context>

<pallas_src>
import jax
import jax.numpy as jnp
from jax.experimental import pallas as pl
from jax.experimental.pallas import tpu as pltpu

LANE = 128


def fnn_kernel(x_ref, w1_ref, b1_ref, w2_ref, b2_ref, w3_ref, b3_ref, out_ref):
    x = x_ref[...]

    # ---- layer 1: Linear(n1, n2p) + sigmoid (tanh form: 1 EUP op) ----
    h1 = jnp.dot(x, w1_ref[...], preferred_element_type=jnp.float32) + b1_ref[...]
    h1 = 0.5 * (jnp.tanh(0.5 * h1) + 1.0)

    # ---- layer 2: Linear(n2p, n3p) + softplus (stable, branch-free) ----
    h2 = jnp.dot(h1, w2_ref[...], preferred_element_type=jnp.float32) + b2_ref[...]
    h2 = jnp.log1p(jnp.exp(-jnp.abs(h2))) + jnp.maximum(h2, 0.0)

    # ---- layer 3: Linear(n3p, 128) (only column 0 is real) ----
    out = jnp.dot(h2, w3_ref[...], preferred_element_type=jnp.float32) + b3_ref[...]
    out_ref[...] = out.astype(out_ref.dtype)


def _pad_to(n, m):
    return ((n + m - 1) // m) * m


def fnn_forward(x, w1, b1, w2, b2, w3, b3, *, tb=256):
    """x: (B, n1); w_i stored (in, out); b_i (1, out). Returns (B, 1)."""
    x = jnp.asarray(x, jnp.float32)
    B, n1 = x.shape
    n2 = w1.shape[1]
    n3 = w2.shape[1]

    # ---- lane-pad hidden / output feature dims to 128 (zero padding) ----
    n2p = max(LANE, _pad_to(n2, LANE))
    n3p = max(LANE, _pad_to(n3, LANE))
    nop = LANE  # padded output width; real output is column 0

    w1p = jnp.zeros((n1, n2p), jnp.float32).at[:, :n2].set(w1)
    b1p = jnp.zeros((1, n2p), jnp.float32).at[:, :n2].set(jnp.reshape(b1, (1, n2)))
    w2p = jnp.zeros((n2p, n3p), jnp.float32).at[:n2, :n3].set(w2)
    b2p = jnp.zeros((1, n3p), jnp.float32).at[:, :n3].set(jnp.reshape(b2, (1, n3)))
    w3p = jnp.zeros((n3p, nop), jnp.float32).at[:n3, :1].set(w3)
    b3p = jnp.zeros((1, nop), jnp.float32).at[:, :1].set(jnp.reshape(b3, (1, 1)))

    # ---- batch tiling (TB multiple of 8); pad B up to a tile multiple ----
    tb = max(8, min(int(tb), _pad_to(B, 8)))
    tb = _pad_to(tb, 8)
    Bp = _pad_to(B, tb)
    xp = x if Bp == B else jnp.zeros((Bp, n1), jnp.float32).at[:B].set(x)

    grid = (Bp // tb,)
    resident = lambda a: pl.BlockSpec(a.shape, lambda i: (0,) * a.ndim)

    out = pl.pallas_call(
        fnn_kernel,
        out_shape=jax.ShapeDtypeStruct((Bp, nop), jnp.float32),
        grid=grid,
        in_specs=[
            pl.BlockSpec((tb, n1), lambda i: (i, 0)),   # x: batch-tiled
            resident(w1p), resident(b1p),               # weights/biases resident
            resident(w2p), resident(b2p),
            resident(w3p), resident(b3p),
        ],
        out_specs=pl.BlockSpec((tb, nop), lambda i: (i, 0)),
        compiler_params=pltpu.CompilerParams(
            dimension_semantics=("parallel",),
        ),
    )(xp, w1p, b1p, w2p, b2p, w3p, b3p)

    return out[:B, :1]


def init_linear_params(key, fan_in, fan_out):
    # PyTorch nn.Linear default: U(-1/sqrt(fan_in), 1/sqrt(fan_in))
    kw, kb = jax.random.split(key)
    bound = 1.0 / jnp.sqrt(fan_in)
    w = jax.random.uniform(kw, (fan_in, fan_out), jnp.float32, -bound, bound)
    b = jax.random.uniform(kb, (1, fan_out), jnp.float32, -bound, bound)
    return w, b


if __name__ == "__main__":
    # Small shapes consistent with FNN(n1, n2, n3)
    B, n1, n2, n3 = 8, 32, 64, 32

    key = jax.random.PRNGKey(0)
    kx, k1, k2, k3 = jax.random.split(key, 4)

    x = jax.random.normal(kx, (B, n1), jnp.float32)
    w1, b1 = init_linear_params(k1, n1, n2)
    w2, b2 = init_linear_params(k2, n2, n3)
    w3, b3 = init_linear_params(k3, n3, 1)

    out = fnn_forward(x, w1, b1, w2, b2, w3, b3)
    jax.block_until_ready(out)

    # Correctness check against plain-JAX reference (unpadded math)
    ref = jax.nn.softplus(jax.nn.sigmoid(x @ w1 + b1) @ w2 + b2) @ w3 + b3
    assert out.shape == (B, 1)
    assert jnp.allclose(out, ref, atol=1e-4, rtol=1e-4), "mismatch vs reference"

    print("KERNEL_OK")
</pallas_src>

<mosaic_0001>
module attributes {stable_mosaic.version = 11 : i64} {
  func.func @fnn_kernel(%arg0: i32, %arg1: memref<8x32xf32, #tpu.memory_space<vmem>>, %arg2: memref<32x128xf32, #tpu.memory_space<vmem>>, %arg3: memref<1x128xf32, #tpu.memory_space<vmem>>, %arg4: memref<128x128xf32, #tpu.memory_space<vmem>>, %arg5: memref<1x128xf32, #tpu.memory_space<vmem>>, %arg6: memref<128x128xf32, #tpu.memory_space<vmem>>, %arg7: memref<1x128xf32, #tpu.memory_space<vmem>>, %arg8: memref<8x128xf32, #tpu.memory_space<vmem>>) attributes {dimension_semantics = [#tpu.dimension_semantics<parallel>], iteration_bounds = array<i64: 1>, scalar_prefetch = 0 : i64, scratch_operands = 0 : i64, tpu.core_type = #tpu.core_type<tc>, window_params = [{transform_indices = @transform_0, window_bounds = array<i64: 8, 32>}, {pipeline_mode = #tpu.pipeline_mode<synchronous>, transform_indices = @transform_1, window_bounds = array<i64: 32, 128>}, {pipeline_mode = #tpu.pipeline_mode<synchronous>, transform_indices = @transform_2, window_bounds = array<i64: 1, 128>}, {pipeline_mode = #tpu.pipeline_mode<synchronous>, transform_indices = @transform_3, window_bounds = array<i64: 128, 128>}, {pipeline_mode = #tpu.pipeline_mode<synchronous>, transform_indices = @transform_4, window_bounds = array<i64: 1, 128>}, {pipeline_mode = #tpu.pipeline_mode<synchronous>, transform_indices = @transform_5, window_bounds = array<i64: 128, 128>}, {pipeline_mode = #tpu.pipeline_mode<synchronous>, transform_indices = @transform_6, window_bounds = array<i64: 1, 128>}, {transform_indices = @transform_7, window_bounds = array<i64: 8, 128>}]} {
    %c0 = arith.constant 0 : index
    %c0_0 = arith.constant 0 : index
    %0 = vector.load %arg1[%c0, %c0_0] : memref<8x32xf32, #tpu.memory_space<vmem>>, vector<8x32xf32>
    %c0_1 = arith.constant 0 : index
    %c0_2 = arith.constant 0 : index
    %1 = vector.load %arg2[%c0_1, %c0_2] : memref<32x128xf32, #tpu.memory_space<vmem>>, vector<32x128xf32>
    %cst = arith.constant dense<0.000000e+00> : vector<8x128xf32>
    %2 = tpu.matmul %0, %1, %cst {dimension_numbers = #tpu.dot_dimension_numbers<[1], [0], [0], [1], [0, 0, 1, 1], [], []>} : vector<8x32xf32>, vector<32x128xf32>, vector<8x128xf32> -> vector<8x128xf32>
    %c0_3 = arith.constant 0 : index
    %c0_4 = arith.constant 0 : index
    %3 = vector.load %arg3[%c0_3, %c0_4] : memref<1x128xf32, #tpu.memory_space<vmem>>, vector<1x128xf32>
    %4 = vector.broadcast %3 : vector<1x128xf32> to vector<8x128xf32>
    %5 = arith.addf %2, %4 : vector<8x128xf32>
    %cst_5 = arith.constant 5.000000e-01 : f32
    %6 = vector.broadcast %cst_5 : f32 to vector<8x128xf32>
    %7 = arith.mulf %6, %5 : vector<8x128xf32>
    %8 = math.tanh %7 : vector<8x128xf32>
    %cst_6 = arith.constant 1.000000e+00 : f32
    %9 = vector.broadcast %cst_6 : f32 to vector<8x128xf32>
    %10 = arith.addf %8, %9 : vector<8x128xf32>
    %cst_7 = arith.constant 5.000000e-01 : f32
    %11 = vector.broadcast %cst_7 : f32 to vector<8x128xf32>
    %12 = arith.mulf %11, %10 : vector<8x128xf32>
    %c0_8 = arith.constant 0 : index
    %c0_9 = arith.constant 0 : index
    %13 = vector.load %arg4[%c0_8, %c0_9] : memref<128x128xf32, #tpu.memory_space<vmem>>, vector<128x128xf32>
    %cst_10 = arith.constant dense<0.000000e+00> : vector<8x128xf32>
    %14 = tpu.matmul %12, %13, %cst_10 {dimension_numbers = #tpu.dot_dimension_numbers<[1], [0], [0], [1], [0, 0, 1, 1], [], []>} : vector<8x128xf32>, vector<128x128xf32>, vector<8x128xf32> -> vector<8x128xf32>
    %c0_11 = arith.constant 0 : index
    %c0_12 = arith.constant 0 : index
    %15 = vector.load %arg5[%c0_11, %c0_12] : memref<1x128xf32, #tpu.memory_space<vmem>>, vector<1x128xf32>
    %16 = vector.broadcast %15 : vector<1x128xf32> to vector<8x128xf32>
    %17 = arith.addf %14, %16 : vector<8x128xf32>
    %18 = math.absf %17 : vector<8x128xf32>
    %cst_13 = arith.constant 0.000000e+00 : f32
    %19 = vector.broadcast %cst_13 : f32 to vector<8x128xf32>
    %20 = arith.subf %19, %18 : vector<8x128xf32>
    %21 = math.exp %20 : vector<8x128xf32>
    %22 = math.log1p %21 : vector<8x128xf32>
    %cst_14 = arith.constant 0.000000e+00 : f32
    %23 = vector.broadcast %cst_14 : f32 to vector<8x128xf32>
    %24 = arith.maximumf %17, %23 : vector<8x128xf32>
    %25 = arith.addf %22, %24 : vector<8x128xf32>
    %c0_15 = arith.constant 0 : index
    %c0_16 = arith.constant 0 : index
    %26 = vector.load %arg6[%c0_15, %c0_16] : memref<128x128xf32, #tpu.memory_space<vmem>>, vector<128x128xf32>
    %cst_17 = arith.constant dense<0.000000e+00> : vector<8x128xf32>
    %27 = tpu.matmul %25, %26, %cst_17 {dimension_numbers = #tpu.dot_dimension_numbers<[1], [0], [0], [1], [0, 0, 1, 1], [], []>} : vector<8x128xf32>, vector<128x128xf32>, vector<8x128xf32> -> vector<8x128xf32>
    %c0_18 = arith.constant 0 : index
    %c0_19 = arith.constant 0 : index
    %28 = vector.load %arg7[%c0_18, %c0_19] : memref<1x128xf32, #tpu.memory_space<vmem>>, vector<1x128xf32>
    %29 = vector.broadcast %28 : vector<1x128xf32> to vector<8x128xf32>
    %30 = arith.addf %27, %29 : vector<8x128xf32>
    %c0_20 = arith.constant 0 : index
    %c0_21 = arith.constant 0 : index
    %31 = vector.load %arg8[%c0_20, %c0_21] : memref<8x128xf32, #tpu.memory_space<vmem>>, vector<8x128xf32>
    tpu.vector_store %arg8[%c0_20, %c0_21], %30 {strides = array<i32>} : memref<8x128xf32, #tpu.memory_space<vmem>>, vector<8x128xf32>,
    return
  }
  func.func @transform_0(%arg0: i32) -> (i32, i32) {
    %c0_i32 = arith.constant 0 : i32
    %c0_i32_0 = arith.constant 0 : i32
    return %arg0, %c0_i32 : i32, i32
  }
  func.func @transform_1(%arg0: i32) -> (i32, i32) {
    %c0_i32 = arith.constant 0 : i32
    %c0_i32_0 = arith.constant 0 : i32
    %c0_i32_1 = arith.constant 0 : i32
    return %c0_i32, %c0_i32_0 : i32, i32
  }
  func.func @transform_2(%arg0: i32) -> (i32, i32) {
    %c0_i32 = arith.constant 0 : i32
    %c0_i32_0 = arith.constant 0 : i32
    %c0_i32_1 = arith.constant 0 : i32
    return %c0_i32, %c0_i32_0 : i32, i32
  }
  func.func @transform_3(%arg0: i32) -> (i32, i32) {
    %c0_i32 = arith.constant 0 : i32
    %c0_i32_0 = arith.constant 0 : i32
    %c0_i32_1 = arith.constant 0 : i32
    return %c0_i32, %c0_i32_0 : i32, i32
  }
  func.func @transform_4(%arg0: i32) -> (i32, i32) {
    %c0_i32 = arith.constant 0 : i32
    %c0_i32_0 = arith.constant 0 : i32
    %c0_i32_1 = arith.constant 0 : i32
    return %c0_i32, %c0_i32_0 : i32, i32
  }
  func.func @transform_5(%arg0: i32) -> (i32, i32) {
    %c0_i32 = arith.constant 0 : i32
    %c0_i32_0 = arith.constant 0 : i32
    %c0_i32_1 = arith.constant 0 : i32
    return %c0_i32, %c0_i32_0 : i32, i32
  }
  func.func @transform_6(%arg0: i32) -> (i32, i32) {
    %c0_i32 = arith.constant 0 : i32
    %c0_i32_0 = arith.constant 0 : i32
    %c0_i32_1 = arith.constant 0 : i32
    return %c0_i32, %c0_i32_0 : i32, i32
  }
  func.func @transform_7(%arg0: i32) -> (i32, i32) {
    %c0_i32 = arith.constant 0 : i32
    %c0_i32_0 = arith.constant 0 : i32
    return %arg0, %c0_i32 : i32, i32
  }
}

</mosaic_0001>

<bundles_post_ra>
// kernel: tpu_custom_call.1
= control target key start
LH: loop header
LB: loop body
LE: loop exit
PB: predicated region body
PF: predicated region fallthrough
CT: control target
= control target key end

     0   :  { %12 = vsyncpa [#allocation3], 0  ;;  %s456_s0 = inlined_call_operand.hbm [shape: f32[8,32], index: 0, kind: input, shape index: {}]   ;;  %s457_s1 = inlined_call_operand.hbm [shape: f32[32,128], index: 1, kind: input, shape index: {}]   ;;  %s458_s2 = inlined_call_operand.vmem [shape: f32[1,128], index: 2, kind: input, shape index: {}]   ;;  %s459_s3 = inlined_call_operand.hbm [shape: f32[128,128], index: 3, kind: input, shape index: {}]   ;;  %s460_s4 = inlined_call_operand.vmem [shape: f32[1,128], index: 4, kind: input, shape index: {}]   ;;  %s461_s5 = inlined_call_operand.hbm [shape: f32[128,128], index: 5, kind: input, shape index: {}]   ;;  %s462_s6 = inlined_call_operand.vmem [shape: f32[1,128], index: 6, kind: input, shape index: {}]   ;;  %s463_s7 = inlined_call_operand.hbm [shape: f32[8,128], index: 7, kind: output, shape index: {}]  }
   0x1   :  { %13 = vsyncpa [#allocation6], 0 }
   0x2   :  { %14 = vsyncpa [#allocation9], 0  ;;  %s31_s26 = sshll.u32 %s457_s1, 4  ;;  %s32_s26 = int_to_ptr.hbm [resolvable:$true] %s31_s26 }
   0x3   :  { %15 = vsyncpa [#allocation4], 0  ;;  %s385_s27 = smov [#allocation5]   ;;  %s21_s8 = sshll.u32 %s456_s0, 4  ;;  %s22_s8 = int_to_ptr.hbm [resolvable:$true] %s21_s8 }
   0x4   :  { %s33_s28 = sshll.u32 %s385_s27, 4  ;;  %s386_s9 = smov 128   ;;  %s34_s28 = int_to_ptr.vmem [resolvable:$true] %s33_s28 }
   0x5   :  { %s387_s10 = smov 8   ;;  %s388_s11 = smov [#allocation2]  }
   0x6   :  { %39 = dma.hbm_to_vmem [thread:$0]  %s32_s26, 512, %s34_s28, [#allocation6], %s386_s9, %s386_s9, %s387_s10  }
   0x7   :  { %s23_s12 = sshll.u32 %s388_s11, 4  ;;  %s46_s15 = sshll.u32 %s459_s3, 4  ;;  %s24_s12 = int_to_ptr.vmem [resolvable:$true] %s23_s12  ;;  %s47_s15 = int_to_ptr.hbm [resolvable:$true] %s46_s15 }
   0x8   :  { %26 = dma.hbm_to_vmem [thread:$0]  %s22_s8, 128, %s24_s12, [#allocation3]  }
   0x9   :  { %s61_s17 = sshll.u32 %s461_s5, 4  ;;  %s389_s18 = smov [#allocation7]   ;;  %s62_s17 = int_to_ptr.hbm [resolvable:$true] %s61_s17 }
   0xa   :  { %s48_s19 = sshll.u32 %s389_s18, 4  ;;  %s390_s0 = smov [#allocation8]   ;;  %s49_s19 = int_to_ptr.vmem [resolvable:$true] %s48_s19 }
   0xb   :  { %54 = dma.hbm_to_vmem [thread:$0]  %s47_s15, 2048, %s49_s19, [#allocation6], %s386_s9, %s386_s9, %s387_s10  }
   0xc   :  { %s63_s20 = sshll.u32 %s390_s0, 4  ;;  %s64_s20 = int_to_ptr.vmem [resolvable:$true] %s63_s20 }
   0xd   :  { %69 = dma.hbm_to_vmem [thread:$0]  %s62_s17, 2048, %s64_s20, [#allocation9], %s386_s9, %s386_s9, %s387_s10  }
   0xe   :  { %377 = dma.done.wait [#allocation3], 128  }
   0xf   :  { %378 = vsyncadd [#allocation3], 4294967168 }
  0x10   :  { %379 = dma.done.wait [#allocation6], 2560  }
  0x11   :  { %380 = vsyncadd [#allocation6], 4294964736 }
  0x12   :  { %381 = dma.done.wait [#allocation9], 2048  }
  0x13   :  { %382 = vsyncadd [#allocation9], 4294965248  ;;  %v92_v0 = vld [vmem:[#allocation5 + $0x18] sm:$0xff]  ;;  %v91_v1 = vld [vmem:[#allocation5 + $0x10] sm:$0xff]  ;;  %vm97_vm0 = vcmask 261120   ;;  %s391_s23 = smov [#allocation10]  }
  0x14   :  { %113 = vmatpush.msra.mxu0 %v92_v0  ;;  %v140_v2 = vld [vmem:[#allocation7 + $0x78] sm:$0xff]  ;;  %v90_v3 = vld [vmem:[#allocation5 + $0x8] sm:$0xff]  ;;  %v139_v4 = vld [vmem:[#allocation7 + $0x70] sm:$0xff]  ;;  %s226_s24 = sshll.u32 %s391_s23, 4  ;;  %s228_s27 = sshll.u32 %s463_s7, 4  ;;  %s227_s24 = int_to_ptr.vmem [resolvable:$true] %s226_s24  ;;  %s229_s27 = int_to_ptr.hbm [resolvable:$true] %s228_s27 }
  0x15   :  { %145 = vmatpush.msra.mxu1 %v140_v2  ;;  %v138_v5 = vld [vmem:[#allocation7 + $0x68] sm:$0xff]  ;;  %v89_v6 = vld [vmem:[#allocation5] sm:$0xff]  ;;  %v88_v7 = vld [vmem:[#allocation2] sm:$0xff] }
  0x16   :  { %114 = vmatpush.msra.mxu0 %v91_v1  ;;  %v137_v8 = vld [vmem:[#allocation7 + $0x60] sm:$0xff]  ;;  %v136_v9 = vld [vmem:[#allocation7 + $0x58] sm:$0xff]  ;;  %v135_v10 = vld [vmem:[#allocation7 + $0x50] sm:$0xff] }
  0x17   :  { %146 = vmatpush.msra.mxu1 %v139_v4  ;;  %v134_v11 = vld [vmem:[#allocation7 + $0x48] sm:$0xff]  ;;  %v133_v12 = vld [vmem:[#allocation7 + $0x40] sm:$0xff]  ;;  %v132_v13 = vld [vmem:[#allocation7 + $0x38] sm:$0xff] }
  0x18   :  { %115 = vmatpush.msra.mxu0 %v90_v3  ;;  %v131_v14 = vld [vmem:[#allocation7 + $0x30] sm:$0xff]  ;;  %v130_v15 = vld [vmem:[#allocation7 + $0x28] sm:$0xff]  ;;  %v129_v16 = vld [vmem:[#allocation7 + $0x20] sm:$0xff] }
  0x19   :  { %147 = vmatpush.msra.mxu1 %v138_v5  ;;  %v128_v17 = vld [vmem:[#allocation7 + $0x18] sm:$0xff]  ;;  %v127_v18 = vld [vmem:[#allocation7 + $0x10] sm:$0xff]  ;;  %v126_v19 = vld [vmem:[#allocation7 + $0x8] sm:$0xff] }
  0x1a   :  { %116 = vmatpush.msra.mxu0 %v89_v6  ;;  %v125_v20 = vld [vmem:[#allocation7] sm:$0xff]  ;;  %v195_v21 = vld [vmem:[#allocation8 + $0x78] sm:$0xff]  ;;  %v194_v29 = vld [vmem:[#allocation8 + $0x70] sm:$0xff] }
  0x1b   :  { %240 = vmatmul.msk.f32.vlgmr.msra.gmra.mxu0 %vm97_vm0, %v88_v7  ;;  %148 = vmatpush.msra.mxu1 %v137_v8  ;;  %v248_v22 = vld [vmem:[%s458_s2] ss:$0 sm:$0xff]  ;;  %v193_v30 = vld [vmem:[#allocation8 + $0x68] sm:$0xff]  ;;  %v192_v31 = vld [vmem:[#allocation8 + $0x60] sm:$0xff] }
  0x1c   :  { %200 = vmatpush.msra.mxu2 %v195_v21  ;;  %v191_v32 = vld [vmem:[#allocation8 + $0x58] sm:$0xff]  ;;  %v190_v33 = vld [vmem:[#allocation8 + $0x50] sm:$0xff]  ;;  %v189_v34 = vld [vmem:[#allocation8 + $0x48] sm:$0xff] }
  0x1d   :  { %149 = vmatpush.msra.mxu1 %v136_v9  ;;  %v188_v35 = vld [vmem:[#allocation8 + $0x40] sm:$0xff]  ;;  %v187_v36 = vld [vmem:[#allocation8 + $0x38] sm:$0xff]  ;;  %v186_v37 = vld [vmem:[#allocation8 + $0x30] sm:$0xff] }
  0x1e   :  { %201 = vmatpush.msra.mxu2 %v194_v29  ;;  %v185_v38 = vld [vmem:[#allocation8 + $0x28] sm:$0xff]  ;;  %v184_v39 = vld [vmem:[#allocation8 + $0x20] sm:$0xff]  ;;  %v183_v40 = vld [vmem:[#allocation8 + $0x18] sm:$0xff] }
  0x1f   :  { %150 = vmatpush.msra.mxu1 %v135_v10  ;;  %v182_v41 = vld [vmem:[#allocation8 + $0x10] sm:$0xff]  ;;  %v181_v42 = vld [vmem:[#allocation8 + $0x8] sm:$0xff]  ;;  %v180_v43 = vld [vmem:[#allocation8] sm:$0xff] }
  0x20   :  { %202 = vmatpush.msra.mxu2 %v193_v30  ;;  %v249_v44 = vld [vmem:[%s460_s4] ss:$0 sm:$0xff] }
  0x21   :  { %151 = vmatpush.msra.mxu1 %v134_v11  ;;  %v250_v61 = vld [vmem:[%s462_s6] ss:$0 sm:$0xff] }
  0x22   :  { %203 = vmatpush.msra.mxu2 %v192_v31 }
  0x23   :  { %152 = vmatpush.msra.mxu1 %v133_v12 }
  0x24   :  { %204 = vmatpush.msra.mxu2 %v191_v32 }
  0x25   :  { %153 = vmatpush.msra.mxu1 %v132_v13 }
  0x26   :  { %205 = vmatpush.msra.mxu2 %v190_v33 }
  0x27   :  { %154 = vmatpush.msra.mxu1 %v131_v14 }
  0x28   :  { %206 = vmatpush.msra.mxu2 %v189_v34 }
  0x29   :  { %155 = vmatpush.msra.mxu1 %v130_v15 }
  0x2a   :  { %207 = vmatpush.msra.mxu2 %v188_v35 }
  0x2b   :  { %156 = vmatpush.msra.mxu1 %v129_v16 }
  0x2c   :  { %208 = vmatpush.msra.mxu2 %v187_v36 }
  0x2d   :  { %157 = vmatpush.msra.mxu1 %v128_v17 }
  0x2e   :  { %209 = vmatpush.msra.mxu2 %v186_v37 }
  0x2f   :  { %158 = vmatpush.msra.mxu1 %v127_v18 }
  0x30   :  { %210 = vmatpush.msra.mxu2 %v185_v38 }
  0x31   :  { %159 = vmatpush.msra.mxu1 %v126_v19 }
  0x32   :  { %211 = vmatpush.msra.mxu2 %v184_v39 }
  0x33   :  { %160 = vmatpush.msra.mxu1 %v125_v20 }
  0x34   :  { %212 = vmatpush.msra.mxu2 %v183_v40 }
  0x36   :  { %213 = vmatpush.msra.mxu2 %v182_v41 }
  0x38   :  { %214 = vmatpush.msra.mxu2 %v181_v42 }
  0x3a   :  { %215 = vmatpush.msra.mxu2 %v180_v43 }
  0x98   :  { %v118_v23 = vpop.f32.mrf.mxu0 }
  0x99   :  { %v119_v24 = vadd.f32 %v248_v22, %v118_v23 }
  0x9b   :  { %v121_v25 = vmul.f32 0.5, %v119_v24 }
  0x9d   :  { %251 = vtanh.f32 %v121_v25 }
  0xa3   :  { %v252_v26 = vpop.eup %251 }
  0xa4   :  { %v123_v27 = vadd.f32 1.0, %v252_v26 }
  0xa6   :  { %v124_v28 = vmul.f32 0.5, %v123_v27 }
  0xa8   :  { %161 = vmatmul.f32.vlgmr.msra.gmra.mxu1 %v124_v28 }
 0x125   :  { %v162_v45 = vpop.f32.mrf.mxu1 }
 0x126   :  { %v163_v46 = vadd.f32 %v249_v44, %v162_v45 }
 0x128   :  { %v165_v47 = vand.u32 2147483647, %v163_v46  ;;  %v178_v58 = vmax.f32 %v163_v46, 0.0 }
 0x12a   :  { %v166_v48 = vsub.f32 0.0, %v165_v47 }
 0x12c   :  { %v167_v49 = vmul.f32 1.442695, %v166_v48 }
 0x12e   :  { %253 = vpow2.f32 %v167_v49 }
 0x134   :  { %v254_v50 = vpop.eup %253 }
 0x135   :  { %v169_v51 = vadd.f32 1.0, %v254_v50  ;;  %v172_v52 = vmul.f32 -0.5, %v254_v50  ;;  %v175_v54 = vand.u32 2147483647, %v254_v50 }
 0x137   :  { %255 = vlog2.f32 %v169_v51  ;;  %v173_v53 = vadd.f32 1.0, %v172_v52  ;;  %vm176_vm1 = vcmp.lt.f32.partialorder %v175_v54, 0.0004427343 }
 0x139   :  { %v174_v57 = vmul.f32 %v254_v50, %v173_v53 }
 0x13d   :  { %v256_v55 = vpop.eup %255 }
 0x13e   :  { %v171_v56 = vmul.f32 0.6931472, %v256_v55 }
 0x140   :  { %v177_v59 = vsel %vm176_vm1, %v174_v57, %v171_v56 }
 0x141   :  { %v179_v60 = vadd.f32 %v178_v58, %v177_v59 }
 0x143   :  { %216 = vmatmul.f32.vlgmr.msra.gmra.mxu2 %v179_v60 }
 0x1c6   :  { %v217_v62 = vpop.f32.mrf.mxu2 }
 0x1c7   :  { %v218_v63 = vadd.f32 %v250_v61, %v217_v62 }
 0x1c9   :  { %220 = vst [vmem:[#allocation10] sm:$0xff] %v218_v63 }
 0x1ca   :  { %231 = dma.vmem_to_hbm [thread:$0]  %s227_s24, 128, %s229_s27, [#allocation4]  }
 0x1cb   :  { %383 = dma.done.wait [#allocation4], 128  }
 0x1cc   :  { %384 = vsyncadd [#allocation4], 4294967168 }
 0x1cd   :  { %236 = vsyncpa [#allocation3], 1 }
 0x1ce   :  { %237 = vsyncpa [#allocation6], 1 }
 0x1cf   :  { %238 = vsyncpa [#allocation9], 1 }
 0x1d0   :  { %239 = vsyncpa [#allocation4], 1 }

</bundles_post_ra>
